<compile_context>
chip_gen: v7x
topology: tpu7x:2x2x1
jax: 0.10.0
libtpu: 0.0.40
codegen_flags: <defaults>
</compile_context>

<pallas_src>
import functools

import jax
import jax.numpy as jnp
from jax.experimental import pallas as pl
from jax.experimental.pallas import tpu as pltpu


def _round_up(x, m):
    return ((x + m - 1) // m) * m


def _pow2_tile(max_tile, cap):
    """Largest power-of-two multiple of 128 that is <= min(max_tile, cap)."""
    t = 128
    while t * 2 <= min(max_tile, cap):
        t *= 2
    return t


# ---------------------------------------------------------------------------
# Kernel 1: one MessagePassing layer, tiled over (node tiles i, source tiles k)
# ---------------------------------------------------------------------------
def _mp_kernel(adj_ref, hsrc_ref, hself_ref, invdeg_ref,
               wa_ref, ba_ref, wb_ref, bb_ref,
               out_ref, acc_ref, *, neighbor_aggr, apply_relu):
    k = pl.program_id(1)

    @pl.when(k == 0)
    def _():
        acc_ref[...] = jnp.zeros_like(acc_ref)

    # Neighbour aggregation acc += A[i, k] @ H[k] on the native bf16 MXU path:
    #   * adj lives in HBM as int8 {0,1}; upcast to bf16 (exact) right before
    #     the dot -> half the HBM bytes of bf16 storage, no f32 emulation.
    #   * the f32 features are split hi/lo into two bf16 operands; because adj
    #     is exactly {0,1} and accumulation is f32, adj@h_hi + adj@h_lo
    #     reproduces the f32 result far inside the 1e-4 tolerance.
    a = adj_ref[...].astype(jnp.bfloat16)
    h = hsrc_ref[...]
    h_hi = h.astype(jnp.bfloat16)
    h_lo = (h - h_hi.astype(jnp.float32)).astype(jnp.bfloat16)
    acc_ref[...] += (jnp.dot(a, h_hi, preferred_element_type=jnp.float32)
                     + jnp.dot(a, h_lo, preferred_element_type=jnp.float32))

    @pl.when(k == pl.num_programs(1) - 1)
    def _():
        # x_node = fc1(h_i)  (tiny vs the aggregation; kept in exact f32)
        z = jnp.dot(hself_ref[...], wa_ref[...],
                    preferred_element_type=jnp.float32) + ba_ref[...]
        # m = fc2(adj @ h)  (bias added before the mean-normalisation, exactly
        # like the PyTorch module)
        m = jnp.dot(acc_ref[...], wb_ref[...],
                    preferred_element_type=jnp.float32) + bb_ref[...]
        if neighbor_aggr == 'mean':
            m = m * invdeg_ref[...]          # divide -> multiply by 1/deg
        z = z + m
        if apply_relu:
            z = jnp.maximum(z, 0.0)
        out_ref[...] = z
        # TODO(synk): fc1/fc2 could be fused into one concat([h, agg]) @ W
        # matmul; skipped because the projection term is negligible vs adj.


def _mp_layer(h, adj_i8, inv_deg, wa, ba, wb, bb, *,
              neighbor_aggr, apply_relu, tile_i, tile_k, vmem_limit):
    n_pad, f_in = h.shape
    f_out = wa.shape[1]
    grid = (n_pad // tile_i, n_pad // tile_k)
    kernel = functools.partial(_mp_kernel, neighbor_aggr=neighbor_aggr,
                               apply_relu=apply_relu)
    cost = pl.CostEstimate(
        flops=int(4 * n_pad * n_pad * f_in + 4 * n_pad * f_in * f_out),
        transcendentals=0,
        bytes_accessed=int(n_pad * n_pad                            # adj (int8)
                           + (n_pad // tile_i) * n_pad * f_in * 4   # hsrc sweeps
                           + n_pad * f_in * 4                       # hself
                           + n_pad * f_out * 4))                    # output
    return pl.pallas_call(
        kernel,
        out_shape=jax.ShapeDtypeStruct((n_pad, f_out), jnp.float32),
        grid_spec=pltpu.PrefetchScalarGridSpec(
            num_scalar_prefetch=0,
            grid=grid,
            in_specs=[
                pl.BlockSpec((tile_i, tile_k), lambda i, k: (i, k)),  # adj tile (int8)
                pl.BlockSpec((tile_k, f_in),   lambda i, k: (k, 0)),  # H source rows
                pl.BlockSpec((tile_i, f_in),   lambda i, k: (i, 0)),  # H self rows
                pl.BlockSpec((tile_i, 1),      lambda i, k: (i, 0)),  # 1/deg
                pl.BlockSpec((f_in, f_out),    lambda i, k: (0, 0)),  # W_fc1
                pl.BlockSpec((1, f_out),       lambda i, k: (0, 0)),  # b_fc1
                pl.BlockSpec((f_in, f_out),    lambda i, k: (0, 0)),  # W_fc2
                pl.BlockSpec((1, f_out),       lambda i, k: (0, 0)),  # b_fc2
            ],
            out_specs=pl.BlockSpec((tile_i, f_out), lambda i, k: (i, 0)),
            scratch_shapes=[pltpu.VMEM((tile_i, f_in), jnp.float32)],
        ),
        compiler_params=pltpu.CompilerParams(
            dimension_semantics=("parallel", "arbitrary"),
            vmem_limit_bytes=vmem_limit),
        cost_estimate=cost,
    )(adj_i8, h, h, inv_deg, wa, ba, wb, bb)


# ---------------------------------------------------------------------------
# Kernel 2: readout (segment sum/mean as P @ h, tiled over node tiles) + fc
# ---------------------------------------------------------------------------
def _readout_kernel(p_ref, h_ref, invc_ref, wfc_ref, bfc_ref,
                    out_ref, acc_ref, *, readout):
    k = pl.program_id(0)

    @pl.when(k == 0)
    def _():
        acc_ref[...] = jnp.zeros_like(acc_ref)

    # Same exact hi/lo bf16 trick as the MP layers (P is {0,1} in bf16).
    h = h_ref[...]
    h_hi = h.astype(jnp.bfloat16)
    h_lo = (h - h_hi.astype(jnp.float32)).astype(jnp.bfloat16)
    p = p_ref[...]
    acc_ref[...] += (jnp.dot(p, h_hi, preferred_element_type=jnp.float32)
                     + jnp.dot(p, h_lo, preferred_element_type=jnp.float32))

    @pl.when(k == pl.num_programs(0) - 1)
    def _():
        pooled = acc_ref[...]
        if readout == 'mean':
            pooled = pooled * invc_ref[...]   # divide -> multiply by 1/count
        out_ref[...] = (jnp.dot(pooled, wfc_ref[...],
                                preferred_element_type=jnp.float32)
                        + bfc_ref[...])


def _readout_fc(h, p_bf16, inv_cnt, wfc, bfc, *, readout, tile, vmem_limit):
    n_pad, f_h = h.shape
    g_pad = p_bf16.shape[0]
    d_out = wfc.shape[1]
    kernel = functools.partial(_readout_kernel, readout=readout)
    cost = pl.CostEstimate(
        flops=int(4 * g_pad * n_pad * f_h + 2 * g_pad * f_h * d_out),
        transcendentals=0,
        bytes_accessed=int(n_pad * f_h * 4 + g_pad * n_pad * 2
                           + g_pad * d_out * 4))
    return pl.pallas_call(
        kernel,
        out_shape=jax.ShapeDtypeStruct((g_pad, d_out), jnp.float32),
        grid_spec=pltpu.PrefetchScalarGridSpec(
            num_scalar_prefetch=0,
            grid=(n_pad // tile,),
            in_specs=[
                pl.BlockSpec((g_pad, tile), lambda k: (0, k)),   # pooling matrix (bf16)
                pl.BlockSpec((tile, f_h),   lambda k: (k, 0)),   # node features
                pl.BlockSpec((g_pad, 1),    lambda k: (0, 0)),   # 1/count
                pl.BlockSpec((f_h, d_out),  lambda k: (0, 0)),   # W_fc
                pl.BlockSpec((1, d_out),    lambda k: (0, 0)),   # b_fc
            ],
            out_specs=pl.BlockSpec((g_pad, d_out), lambda k: (0, 0)),
            scratch_shapes=[pltpu.VMEM((g_pad, f_h), jnp.float32)],
        ),
        compiler_params=pltpu.CompilerParams(
            dimension_semantics=("arbitrary",),
            vmem_limit_bytes=vmem_limit),
        cost_estimate=cost,
    )(p_bf16, h, inv_cnt, wfc, bfc)


# ---------------------------------------------------------------------------
# Wrapper: padding / dtype glue + the three pallas_calls
# ---------------------------------------------------------------------------
def gnn_forward(x, adj, idx, params, *, num_graphs,
                neighbor_aggr='mean', readout='mean',
                tile_i_max=2048, tile_k_max=512):
    """x: (N, Din) f32, adj: (N, N) dense {0,1}, idx: (N,) int32 graph ids."""
    n, d_in = x.shape
    g = num_graphs
    d_out = params['wfc'].shape[1]
    f32 = jnp.float32

    # Tiling geometry: tile_i (output-node rows) is kept large so the h-source
    # stream is re-swept few times, but capped at n_pad/2 so the "parallel"
    # axis keeps >=2 steps (v7x megacore).  tile_k (reduction) stays modest so
    # the double-buffered adj / h blocks fit v7x's 64 MiB VMEM with headroom.
    n128 = _round_up(n, 128)
    tile_k = _pow2_tile(tile_k_max, n128)
    i_cap = n128 if n128 < 256 else max(128, n128 // 2)
    tile_i = _pow2_tile(tile_i_max, min(n128, i_cap))
    n_pad = _round_up(n128, max(tile_i, tile_k))

    d_in_p = _round_up(d_in, 128)
    h_p = _round_up(params['w1a'].shape[1], 128)
    d_out_p = _round_up(d_out, 128)
    g_pad = _round_up(g, 8)          # sublane-aligned graph axis -> unmasked stores
    vmem_limit = 40 * 1024 * 1024    # safe on v7x (64 MiB phys) and below

    def pad2(a, r, c):
        a = a.astype(f32)
        return jnp.pad(a, ((0, r - a.shape[0]), (0, c - a.shape[1])))

    x_p = pad2(x, n_pad, d_in_p)
    # adj stored as int8 {0,1}: exact, and a fraction of the HBM bytes of
    # bf16/f32 on the dominant O(N^2) stream (layers are mem-bound on
    # v6e/v7x).  The upcast to bf16 happens inside the kernel.
    adj_p = pad2(adj, n_pad, n_pad).astype(jnp.int8)

    # Precomputed reciprocals (padding rows are exactly 0 so padded nodes /
    # graphs never contaminate real ones).  Zero-degree real nodes / empty
    # graphs inherit the original module's inf/nan semantics (precondition:
    # deg > 0, count > 0 for real nodes/graphs).
    deg = jnp.sum(adj.astype(f32), axis=1, keepdims=True)               # (N,1)
    inv_deg = pad2(1.0 / deg, n_pad, 1)

    onehot = (idx[None, :] == jnp.arange(g, dtype=idx.dtype)[:, None]).astype(f32)
    p_p = pad2(onehot, g_pad, n_pad).astype(jnp.bfloat16)               # (Gp, Np)
    inv_cnt = pad2(1.0 / jnp.sum(onehot, axis=1, keepdims=True), g_pad, 1)

    # Zero-pad weights/biases; padded rows/cols are exactly zero => same math.
    w1a = pad2(params['w1a'], d_in_p, h_p); b1a = pad2(params['b1a'], 1, h_p)
    w1b = pad2(params['w1b'], d_in_p, h_p); b1b = pad2(params['b1b'], 1, h_p)
    w2a = pad2(params['w2a'], h_p, h_p);    b2a = pad2(params['b2a'], 1, h_p)
    w2b = pad2(params['w2b'], h_p, h_p);    b2b = pad2(params['b2b'], 1, h_p)
    wfc = pad2(params['wfc'], h_p, d_out_p); bfc = pad2(params['bfc'], 1, d_out_p)

    # mp1 -> relu -> (dropout = identity in eval)
    h1 = _mp_layer(x_p, adj_p, inv_deg, w1a, b1a, w1b, b1b,
                   neighbor_aggr=neighbor_aggr, apply_relu=True,
                   tile_i=tile_i, tile_k=tile_k, vmem_limit=vmem_limit)
    # mp2 -> relu -> (dropout = identity in eval)
    h2 = _mp_layer(h1, adj_p, inv_deg, w2a, b2a, w2b, b2b,
                   neighbor_aggr=neighbor_aggr, apply_relu=True,
                   tile_i=tile_i, tile_k=tile_k, vmem_limit=vmem_limit)
    # readout + final Linear
    out = _readout_fc(h2, p_p, inv_cnt, wfc, bfc, readout=readout,
                      tile=max(tile_i, tile_k), vmem_limit=vmem_limit)
    return out[:g, :d_out]


def init_params(key, input_dim, hidden_dim, output_dim):
    """PyTorch-Linear-style init. Weights stored pre-transposed as (in, out)
    so the kernel computes x @ W + b; biases stored as (1, out)."""
    def linear(k, fan_in, fan_out):
        kw, kb = jax.random.split(k)
        bound = 1.0 / jnp.sqrt(fan_in)
        w = jax.random.uniform(kw, (fan_in, fan_out), jnp.float32, -bound, bound)
        b = jax.random.uniform(kb, (1, fan_out), jnp.float32, -bound, bound)
        return w, b

    keys = jax.random.split(key, 5)
    w1a, b1a = linear(keys[0], input_dim, hidden_dim)    # mp1.fc1
    w1b, b1b = linear(keys[1], input_dim, hidden_dim)    # mp1.fc2
    w2a, b2a = linear(keys[2], hidden_dim, hidden_dim)   # mp2.fc1
    w2b, b2b = linear(keys[3], hidden_dim, hidden_dim)   # mp2.fc2
    wfc, bfc = linear(keys[4], hidden_dim, output_dim)   # fc
    return dict(w1a=w1a, b1a=b1a, w1b=w1b, b1b=b1b,
                w2a=w2a, b2a=b2a, w2b=w2b, b2b=b2b,
                wfc=wfc, bfc=bfc)


def gnn_reference(x, adj, idx, params, *, num_graphs,
                  neighbor_aggr='mean', readout='mean'):
    """Pure-JAX reference mirroring the PyTorch forward (eval mode)."""
    deg = adj @ jnp.ones((x.shape[0], 1), jnp.float32)

    def mp(h, wa, ba, wb, bb):
        x_node = h @ wa + ba
        m = (adj @ h) @ wb + bb
        if neighbor_aggr == 'mean':
            m = m / deg
        return x_node + m

    h = jax.nn.relu(mp(x, params['w1a'], params['b1a'], params['w1b'], params['b1b']))
    h = jax.nn.relu(mp(h, params['w2a'], params['b2a'], params['w2b'], params['b2b']))
    out = jax.ops.segment_sum(h, idx, num_segments=num_graphs)
    if readout == 'mean':
        cnt = jax.ops.segment_sum(jnp.ones_like(h), idx, num_segments=num_graphs)
        out = out / cnt
    return out @ params['wfc'] + params['bfc']


if __name__ == "__main__":
    key = jax.random.PRNGKey(0)
    k_x, k_adj, k_param = jax.random.split(key, 3)

    N, INPUT_DIM, HIDDEN_DIM, OUTPUT_DIM, NUM_GRAPHS = 16, 8, 32, 4, 2
    NEIGHBOR_AGGR, READOUT = 'mean', 'mean'

    # Node features.
    x = jax.random.normal(k_x, (N, INPUT_DIM), jnp.float32)

    # Random symmetric binary adjacency with self-loops (dense stand-in for
    # torch.sparse adj; spmm == dense matmul here).
    a = (jax.random.uniform(k_adj, (N, N)) < 0.3).astype(jnp.float32)
    adj = jnp.clip(a + a.T + jnp.eye(N, dtype=jnp.float32), 0.0, 1.0)

    # Graph membership: first half of the nodes -> graph 0, second half -> graph 1.
    idx = jnp.concatenate([jnp.zeros(N // 2, jnp.int32),
                           jnp.ones(N - N // 2, jnp.int32)])

    params = init_params(k_param, INPUT_DIM, HIDDEN_DIM, OUTPUT_DIM)

    out = gnn_forward(x, adj, idx, params, num_graphs=NUM_GRAPHS,
                      neighbor_aggr=NEIGHBOR_AGGR, readout=READOUT)
    out = jax.block_until_ready(out)

    ref = gnn_reference(x, adj, idx, params, num_graphs=NUM_GRAPHS,
                        neighbor_aggr=NEIGHBOR_AGGR, readout=READOUT)
    assert out.shape == (NUM_GRAPHS, OUTPUT_DIM)
    assert jnp.allclose(out, ref, atol=1e-4, rtol=1e-4), "mismatch vs reference"

    print("KERNEL_OK")
</pallas_src>

<mosaic_0001>
module attributes {stable_mosaic.version = 11 : i64} {
  func.func @_mp_kernel(%arg0: i32, %arg1: i32, %arg2: memref<128x128xi8, #tpu.memory_space<vmem>>, %arg3: memref<128x128xf32, #tpu.memory_space<vmem>>, %arg4: memref<128x128xf32, #tpu.memory_space<vmem>>, %arg5: memref<128x1xf32, #tpu.memory_space<vmem>>, %arg6: memref<128x128xf32, #tpu.memory_space<vmem>>, %arg7: memref<1x128xf32, #tpu.memory_space<vmem>>, %arg8: memref<128x128xf32, #tpu.memory_space<vmem>>, %arg9: memref<1x128xf32, #tpu.memory_space<vmem>>, %arg10: memref<128x128xf32, #tpu.memory_space<vmem>>, %arg11: memref<128x128xf32, #tpu.memory_space<vmem>>) attributes {dimension_semantics = [#tpu.dimension_semantics<parallel>, #tpu.dimension_semantics<arbitrary>], iteration_bounds = array<i64: 1, 1>, scalar_prefetch = 0 : i64, scratch_operands = 1 : i64, tpu.core_type = #tpu.core_type<tc>, window_params = [{transform_indices = @transform_0, window_bounds = array<i64: 128, 128>}, {transform_indices = @transform_1, window_bounds = array<i64: 128, 128>}, {transform_indices = @transform_2, window_bounds = array<i64: 128, 128>}, {transform_indices = @transform_3, window_bounds = array<i64: 128, 1>}, {pipeline_mode = #tpu.pipeline_mode<synchronous>, transform_indices = @transform_4, window_bounds = array<i64: 128, 128>}, {pipeline_mode = #tpu.pipeline_mode<synchronous>, transform_indices = @transform_5, window_bounds = array<i64: 1, 128>}, {pipeline_mode = #tpu.pipeline_mode<synchronous>, transform_indices = @transform_6, window_bounds = array<i64: 128, 128>}, {pipeline_mode = #tpu.pipeline_mode<synchronous>, transform_indices = @transform_7, window_bounds = array<i64: 1, 128>}, {transform_indices = @transform_8, window_bounds = array<i64: 128, 128>}]} {
    %c0_i32 = arith.constant 0 : i32
    %0 = arith.cmpi eq, %arg1, %c0_i32 : i32
    %1 = arith.extui %0 : i1 to i32
    %c0_i32_0 = arith.constant 0 : i32
    %2 = arith.cmpi ne, %1, %c0_i32_0 : i32
    scf.if %2 {
      %cst_11 = arith.constant 0.000000e+00 : f32
      %19 = vector.broadcast %cst_11 : f32 to vector<128x128xf32>
      %c0_12 = arith.constant 0 : index
      %c0_13 = arith.constant 0 : index
      %20 = vector.load %arg11[%c0_12, %c0_13] : memref<128x128xf32, #tpu.memory_space<vmem>>, vector<128x128xf32>
      tpu.vector_store %arg11[%c0_12, %c0_13], %19 {strides = array<i32>} : memref<128x128xf32, #tpu.memory_space<vmem>>, vector<128x128xf32>,
    } else {
    }
    %c0 = arith.constant 0 : index
    %c0_1 = arith.constant 0 : index
    %3 = vector.load %arg2[%c0, %c0_1] : memref<128x128xi8, #tpu.memory_space<vmem>>, vector<128x128xi8>
    %4 = arith.sitofp %3 : vector<128x128xi8> to vector<128x128xbf16>
    %c0_2 = arith.constant 0 : index
    %c0_3 = arith.constant 0 : index
    %5 = vector.load %arg3[%c0_2, %c0_3] : memref<128x128xf32, #tpu.memory_space<vmem>>, vector<128x128xf32>
    %6 = arith.truncf %5 : vector<128x128xf32> to vector<128x128xbf16>
    %7 = arith.extf %6 : vector<128x128xbf16> to vector<128x128xf32>
    %8 = arith.subf %5, %7 : vector<128x128xf32>
    %9 = arith.truncf %8 : vector<128x128xf32> to vector<128x128xbf16>
    %c0_4 = arith.constant 0 : index
    %c0_5 = arith.constant 0 : index
    %10 = vector.load %arg11[%c0_4, %c0_5] : memref<128x128xf32, #tpu.memory_space<vmem>>, vector<128x128xf32>
    %cst = arith.constant dense<0.000000e+00> : vector<128x128xf32>
    %11 = tpu.matmul %4, %6, %cst {dimension_numbers = #tpu.dot_dimension_numbers<[1], [0], [0], [1], [0, 0, 1, 1], [], []>} : vector<128x128xbf16>, vector<128x128xbf16>, vector<128x128xf32> -> vector<128x128xf32>
    %cst_6 = arith.constant dense<0.000000e+00> : vector<128x128xf32>
    %12 = tpu.matmul %4, %9, %cst_6 {dimension_numbers = #tpu.dot_dimension_numbers<[1], [0], [0], [1], [0, 0, 1, 1], [], []>} : vector<128x128xbf16>, vector<128x128xbf16>, vector<128x128xf32> -> vector<128x128xf32>
    %13 = arith.addf %11, %12 : vector<128x128xf32>
    %14 = arith.addf %10, %13 : vector<128x128xf32>
    %c0_7 = arith.constant 0 : index
    %c0_8 = arith.constant 0 : index
    %15 = vector.load %arg11[%c0_7, %c0_8] : memref<128x128xf32, #tpu.memory_space<vmem>>, vector<128x128xf32>
    tpu.vector_store %arg11[%c0_7, %c0_8], %14 {strides = array<i32>} : memref<128x128xf32, #tpu.memory_space<vmem>>, vector<128x128xf32>,
    %c0_i32_9 = arith.constant 0 : i32
    %16 = arith.cmpi eq, %arg1, %c0_i32_9 : i32
    %17 = arith.extui %16 : i1 to i32
    %c0_i32_10 = arith.constant 0 : i32
    %18 = arith.cmpi ne, %17, %c0_i32_10 : i32
    scf.if %18 {
      %c0_11 = arith.constant 0 : index
      %c0_12 = arith.constant 0 : index
      %19 = vector.load %arg4[%c0_11, %c0_12] : memref<128x128xf32, #tpu.memory_space<vmem>>, vector<128x128xf32>
      %c0_13 = arith.constant 0 : index
      %c0_14 = arith.constant 0 : index
      %20 = vector.load %arg6[%c0_13, %c0_14] : memref<128x128xf32, #tpu.memory_space<vmem>>, vector<128x128xf32>
      %cst_15 = arith.constant dense<0.000000e+00> : vector<128x128xf32>
      %21 = tpu.matmul %19, %20, %cst_15 {dimension_numbers = #tpu.dot_dimension_numbers<[1], [0], [0], [1], [0, 0, 1, 1], [], []>} : vector<128x128xf32>, vector<128x128xf32>, vector<128x128xf32> -> vector<128x128xf32>
      %c0_16 = arith.constant 0 : index
      %c0_17 = arith.constant 0 : index
      %22 = vector.load %arg7[%c0_16, %c0_17] : memref<1x128xf32, #tpu.memory_space<vmem>>, vector<1x128xf32>
      %23 = vector.broadcast %22 : vector<1x128xf32> to vector<128x128xf32>
      %24 = arith.addf %21, %23 : vector<128x128xf32>
      %c0_18 = arith.constant 0 : index
      %c0_19 = arith.constant 0 : index
      %25 = vector.load %arg11[%c0_18, %c0_19] : memref<128x128xf32, #tpu.memory_space<vmem>>, vector<128x128xf32>
      %c0_20 = arith.constant 0 : index
      %c0_21 = arith.constant 0 : index
      %26 = vector.load %arg8[%c0_20, %c0_21] : memref<128x128xf32, #tpu.memory_space<vmem>>, vector<128x128xf32>
      %cst_22 = arith.constant dense<0.000000e+00> : vector<128x128xf32>
      %27 = tpu.matmul %25, %26, %cst_22 {dimension_numbers = #tpu.dot_dimension_numbers<[1], [0], [0], [1], [0, 0, 1, 1], [], []>} : vector<128x128xf32>, vector<128x128xf32>, vector<128x128xf32> -> vector<128x128xf32>
      %c0_23 = arith.constant 0 : index
      %c0_24 = arith.constant 0 : index
      %28 = vector.load %arg9[%c0_23, %c0_24] : memref<1x128xf32, #tpu.memory_space<vmem>>, vector<1x128xf32>
      %29 = vector.broadcast %28 : vector<1x128xf32> to vector<128x128xf32>
      %30 = arith.addf %27, %29 : vector<128x128xf32>
      %c0_25 = arith.constant 0 : index
      %c0_26 = arith.constant 0 : index
      %31 = vector.load %arg5[%c0_25, %c0_26] : memref<128x1xf32, #tpu.memory_space<vmem>>, vector<128x1xf32>
      %32 = vector.broadcast %31 : vector<128x1xf32> to vector<128x128xf32>
      %33 = arith.mulf %30, %32 : vector<128x128xf32>
      %34 = arith.addf %24, %33 : vector<128x128xf32>
      %cst_27 = arith.constant 0.000000e+00 : f32
      %35 = vector.broadcast %cst_27 : f32 to vector<128x128xf32>
      %36 = arith.maximumf %34, %35 : vector<128x128xf32>
      %c0_28 = arith.constant 0 : index
      %c0_29 = arith.constant 0 : index
      %37 = vector.load %arg10[%c0_28, %c0_29] : memref<128x128xf32, #tpu.memory_space<vmem>>, vector<128x128xf32>
      tpu.vector_store %arg10[%c0_28, %c0_29], %36 {strides = array<i32>} : memref<128x128xf32, #tpu.memory_space<vmem>>, vector<128x128xf32>,
    } else {
    }
    return
  }
  func.func @transform_0(%arg0: i32, %arg1: i32) -> (i32, i32) {
    %c0_i32 = arith.constant 0 : i32
    return %arg0, %arg1 : i32, i32
  }
  func.func @transform_1(%arg0: i32, %arg1: i32) -> (i32, i32) {
    %c0_i32 = arith.constant 0 : i32
    %c0_i32_0 = arith.constant 0 : i32
    return %arg1, %c0_i32 : i32, i32
  }
  func.func @transform_2(%arg0: i32, %arg1: i32) -> (i32, i32) {
    %c0_i32 = arith.constant 0 : i32
    %c0_i32_0 = arith.constant 0 : i32
    return %arg0, %c0_i32 : i32, i32
  }
  func.func @transform_3(%arg0: i32, %arg1: i32) -> (i32, i32) {
    %c0_i32 = arith.constant 0 : i32
    %c0_i32_0 = arith.constant 0 : i32
    return %arg0, %c0_i32 : i32, i32
  }
  func.func @transform_4(%arg0: i32, %arg1: i32) -> (i32, i32) {
    %c0_i32 = arith.constant 0 : i32
    %c0_i32_0 = arith.constant 0 : i32
    %c0_i32_1 = arith.constant 0 : i32
    return %c0_i32, %c0_i32_0 : i32, i32
  }
  func.func @transform_5(%arg0: i32, %arg1: i32) -> (i32, i32) {
    %c0_i32 = arith.constant 0 : i32
    %c0_i32_0 = arith.constant 0 : i32
    %c0_i32_1 = arith.constant 0 : i32
    return %c0_i32, %c0_i32_0 : i32, i32
  }
  func.func @transform_6(%arg0: i32, %arg1: i32) -> (i32, i32) {
    %c0_i32 = arith.constant 0 : i32
    %c0_i32_0 = arith.constant 0 : i32
    %c0_i32_1 = arith.constant 0 : i32
    return %c0_i32, %c0_i32_0 : i32, i32
  }
  func.func @transform_7(%arg0: i32, %arg1: i32) -> (i32, i32) {
    %c0_i32 = arith.constant 0 : i32
    %c0_i32_0 = arith.constant 0 : i32
    %c0_i32_1 = arith.constant 0 : i32
    return %c0_i32, %c0_i32_0 : i32, i32
  }
  func.func @transform_8(%arg0: i32, %arg1: i32) -> (i32, i32) {
    %c0_i32 = arith.constant 0 : i32
    %c0_i32_0 = arith.constant 0 : i32
    return %arg0, %c0_i32 : i32, i32
  }
}

</mosaic_0001>

<bundles_post_ra>
// kernel: tpu_custom_call.1
= control target key start
LH: loop header
LB: loop body
LE: loop exit
PB: predicated region body
PF: predicated region fallthrough
CT: control target
= control target key end

     0   :  { %13 = vsyncpa [#allocation4], 0  ;;  %s1870_s0 = inlined_call_operand.hbm [shape: s8[128,128], index: 0, kind: input, shape index: {}]   ;;  %s1871_s1 = inlined_call_operand.vmem [shape: f32[128,128], index: 1, kind: input, shape index: {}]   ;;  %s1872_s2 = inlined_call_operand.hbm [shape: f32[128,128], index: 2, kind: input, shape index: {}]   ;;  %s1873_s3 = inlined_call_operand.vmem [shape: f32[128,1], index: 3, kind: input, shape index: {}]   ;;  %s1874_s4 = inlined_call_operand.hbm [shape: f32[128,128], index: 4, kind: input, shape index: {}]   ;;  %s1875_s5 = inlined_call_operand.vmem [shape: f32[1,128], index: 5, kind: input, shape index: {}]   ;;  %s1876_s6 = inlined_call_operand.hbm [shape: f32[128,128], index: 6, kind: input, shape index: {}]   ;;  %s1877_s7 = inlined_call_operand.vmem [shape: f32[1,128], index: 7, kind: input, shape index: {}]   ;;  %s1878_s8 = inlined_call_operand.hbm [shape: f32[128,128], index: 8, kind: output, shape index: {}]  }
   0x1   :  { %14 = vsyncpa [#allocation7], 0 }
   0x2   :  { %15 = vsyncpa [#allocation10], 0 }
   0x3   :  { %16 = vsyncpa [#allocation5], 0  ;;  %s1456_s27 = smov [#allocation6]   ;;  %s1457_s29 = smov [#allocation3]  }
   0x4   :  { %s36_s28 = sshll.u32 %s1456_s27, 4  ;;  %s22_s30 = sshll.u32 %s1457_s29, 4  ;;  %s37_s28 = int_to_ptr.vmem [resolvable:$true] %s36_s28  ;;  %s1509_s30 = int_to_ptr.vmem [resolvable:$true] %s22_s30 }
   0x5   :  { %s1338_s11 = scalar_lea.hbm %s1872_s2, 2048 }
   0x6   :  { %p1339_p0 = scmp.ne.s32.totalorder %s1872_s2, %s1338_s11  ;;  %p1342_p1 = scmp.lt.u32.totalorder %s1338_s11, %s1872_s2 }
   0x8   :  { %p1344_p2 = pnand %p1342_p1, %p1339_p0 }
   0xa   :  { %1347 = shalt.err (!%p1344_p2)
}
   0xb   :  { %s1348_s16 = scalar_lea.vmem %s37_s28, 2048  ;;  %p1353_p4 = scmp.lt.s32.totalorder %s37_s28, %s37_s28 }
   0xc   :  { %p1349_p3 = scmp.ne.s32.totalorder %s37_s28, %s1348_s16  ;;  %p1354_p5 = scmp.lt.s32.totalorder %s1348_s16, %s1348_s16 }
   0xe   :  { %p1355_p6 = por %p1354_p5, %p1353_p4 }
  0x10   :  { %p1356_p7 = pnand %p1355_p6, %p1349_p3 }
  0x12   :  { %1359 = shalt.err (!%p1356_p7)
}
  0x13   :  { %s1458_s17 = smov 128   ;;  %s1459_s18 = smov 8  }
  0x14   :  { %42 = dma.hbm_to_vmem [thread:$0]  %s1872_s2, 2048, %s37_s28, [#allocation7], %s1458_s17, %s1458_s17, %s1459_s18  }
  0x15   :  { %s1360_s23 = scalar_lea.hbm %s1870_s0, 512 }
  0x16   :  { %p1361_p8 = scmp.ne.s32.totalorder %s1870_s0, %s1360_s23  ;;  %p1364_p9 = scmp.lt.u32.totalorder %s1360_s23, %s1870_s0 }
  0x18   :  { %p1366_p10 = pnand %p1364_p9, %p1361_p8 }
  0x1a   :  { %1369 = shalt.err (!%p1366_p10)
}
  0x1b   :  { %s1370_s29 = scalar_lea.vmem %s1509_s30, 512  ;;  %p1375_p12 = scmp.lt.s32.totalorder %s1509_s30, %s1509_s30 }
  0x1c   :  { %p1371_p11 = scmp.ne.s32.totalorder %s1509_s30, %s1370_s29  ;;  %p1376_p13 = scmp.lt.s32.totalorder %s1370_s29, %s1370_s29 }
  0x1e   :  { %p1377_p0 = por %p1376_p13, %p1375_p12 }
  0x20   :  { %p1378_p1 = pnand %p1377_p0, %p1371_p11 }
  0x22   :  { %1381 = shalt.err (!%p1378_p1)
}
  0x23   :  { %28 = dma.hbm_to_vmem [thread:$0]  %s1870_s0, 512, %s1509_s30, [#allocation4], %s1458_s17, %s1458_s17, %s1459_s18  }
  0x24   :  { %s1460_s9 = smov [#allocation8]   ;;  %s1461_s11 = smov [#allocation9]  }
  0x25   :  { %s50_s10 = sshll.u32 %s1460_s9, 4  ;;  %s64_s12 = sshll.u32 %s1461_s11, 4  ;;  %s51_s10 = int_to_ptr.vmem [resolvable:$true] %s50_s10  ;;  %s1546_s12 = int_to_ptr.vmem [resolvable:$true] %s64_s12 }
  0x26   :  { %s1382_s15 = scalar_lea.hbm %s1874_s4, 2048 }
  0x27   :  { %p1383_p2 = scmp.ne.s32.totalorder %s1874_s4, %s1382_s15  ;;  %p1386_p3 = scmp.lt.u32.totalorder %s1382_s15, %s1874_s4 }
  0x29   :  { %p1388_p4 = pnand %p1386_p3, %p1383_p2 }
  0x2b   :  { %1391 = shalt.err (!%p1388_p4)
}
  0x2c   :  { %s1392_s0 = scalar_lea.vmem %s51_s10, 2048  ;;  %p1397_p6 = scmp.lt.s32.totalorder %s51_s10, %s51_s10 }
  0x2d   :  { %p1393_p5 = scmp.ne.s32.totalorder %s51_s10, %s1392_s0  ;;  %p1398_p7 = scmp.lt.s32.totalorder %s1392_s0, %s1392_s0 }
  0x2f   :  { %p1399_p8 = por %p1398_p7, %p1397_p6 }
  0x31   :  { %p1400_p9 = pnand %p1399_p8, %p1393_p5 }
  0x33   :  { %1403 = shalt.err (!%p1400_p9)
}
  0x34   :  { %56 = dma.hbm_to_vmem [thread:$0]  %s1874_s4, 2048, %s51_s10, [#allocation7], %s1458_s17, %s1458_s17, %s1459_s18  }
  0x35   :  { %s1404_s25 = scalar_lea.hbm %s1876_s6, 2048 }
  0x36   :  { %p1405_p10 = scmp.ne.s32.totalorder %s1876_s6, %s1404_s25  ;;  %p1408_p11 = scmp.lt.u32.totalorder %s1404_s25, %s1876_s6 }
  0x38   :  { %p1410_p12 = pnand %p1408_p11, %p1405_p10 }
  0x3a   :  { %1413 = shalt.err (!%p1410_p12)
}
  0x3b   :  { %s1414_s28 = scalar_lea.vmem %s1546_s12, 2048  ;;  %p1419_p0 = scmp.lt.s32.totalorder %s1546_s12, %s1546_s12 }
  0x3c   :  { %p1415_p13 = scmp.ne.s32.totalorder %s1546_s12, %s1414_s28  ;;  %p1420_p1 = scmp.lt.s32.totalorder %s1414_s28, %s1414_s28 }
  0x3e   :  { %p1421_p2 = por %p1420_p1, %p1419_p0 }
  0x40   :  { %p1422_p3 = pnand %p1421_p2, %p1415_p13 }
  0x42   :  { %1425 = shalt.err (!%p1422_p3)
}
  0x43   :  { %70 = dma.hbm_to_vmem [thread:$0]  %s1876_s6, 2048, %s1546_s12, [#allocation10], %s1458_s17, %s1458_s17, %s1459_s18  }
  0x44   :  { %1448 = dma.done.wait [#allocation4], 512  }
  0x45   :  { %1449 = vsyncadd [#allocation4], 4294966784 }
  0x46   :  { %1450 = dma.done.wait [#allocation7], 4096  }
  0x47   :  { %1451 = vsyncadd [#allocation7], 4294963200 }
  0x48   :  { %1452 = dma.done.wait [#allocation10], 2048  }
  0x49   :  { %1453 = vsyncadd [#allocation10], 4294965248  ;;  %v118_v0 = vld [vmem:[%s1871_s1] sm:$0xff]  ;;  %v119_v1 = vld [vmem:[%s1871_s1 + $0x8] sm:$0xff] }
  0x4a   :  { %v120_v2 = vld [vmem:[%s1871_s1 + $0x10] sm:$0xff]  ;;  %v1592_v3 = vpack.c.bf16 %v119_v1, %v118_v0  ;;  %v121_v4 = vld [vmem:[%s1871_s1 + $0x18] sm:$0xff]  ;;  %v122_v5 = vld [vmem:[%s1871_s1 + $0x20] sm:$0xff] }
  0x4b   :  { %v123_v6 = vld [vmem:[%s1871_s1 + $0x28] sm:$0xff]  ;;  %v1603_v7 = vpack.c.bf16 %v121_v4, %v120_v2  ;;  %v124_v9 = vld [vmem:[%s1871_s1 + $0x30] sm:$0xff]  ;;  %v125_v10 = vld [vmem:[%s1871_s1 + $0x38] sm:$0xff] }
  0x4c   :  { %v1605_v8 = vpack.c.bf16 %v123_v6, %v122_v5  ;;  %v142_v11 = vunpack.c.l.bf16 %v1592_v3  ;;  %v143_v12 = vunpack.c.h.bf16 %v1592_v3  ;;  %v1615_v13 = vpack.c.bf16 %v125_v10, %v124_v9  ;;  %v126_v18 = vld [vmem:[%s1871_s1 + $0x40] sm:$0xff]  ;;  %v127_v19 = vld [vmem:[%s1871_s1 + $0x48] sm:$0xff]  ;;  %v128_v31 = vld [vmem:[%s1871_s1 + $0x50] sm:$0xff] }
  0x4d   :  { %v144_v14 = vunpack.c.l.bf16 %v1603_v7  ;;  %v145_v15 = vunpack.c.h.bf16 %v1603_v7  ;;  %v1629_v29 = vpack.c.bf16 %v127_v19, %v126_v18  ;;  %v129_v32 = vld [vmem:[%s1871_s1 + $0x58] sm:$0xff]  ;;  %v1637_v35 = vld [vmem:[#allocation3] sm:$0xff]  ;;  %v131_v41 = vld [vmem:[%s1871_s1 + $0x68] sm:$0xff] }
  0x4e   :  { %v146_v16 = vunpack.c.l.bf16 %v1605_v8  ;;  %v147_v17 = vunpack.c.h.bf16 %v1605_v8  ;;  %v158_v20 = vsub.f32 %v118_v0, %v142_v11  ;;  %v159_v21 = vsub.f32 %v119_v1, %v143_v12  ;;  %v130_v40 = vld [vmem:[%s1871_s1 + $0x60] sm:$0xff]  ;;  %v444_v45 = vld [vmem:[#allocation8 + $0x8] sm:$0xff]  ;;  %v445_v46 = vld [vmem:[#allocation8 + $0x10] sm:$0xff] }
  0x4f   :  { %v160_v22 = vsub.f32 %v120_v2, %v144_v14  ;;  %v161_v23 = vsub.f32 %v121_v4, %v145_v15  ;;  %v148_v24 = vunpack.c.l.bf16 %v1615_v13  ;;  %v149_v25 = vunpack.c.h.bf16 %v1615_v13  ;;  %v443_v42 = vld [vmem:[#allocation8] sm:$0xff]  ;;  %v446_v47 = vld [vmem:[#allocation8 + $0x18] sm:$0xff]  ;;  %v132_v54 = vld [vmem:[%s1871_s1 + $0x70] sm:$0xff] }
  0x50   :  { %v174_v26 = vpack.c.bf16 %v159_v21, %v158_v20  ;;  %v162_v27 = vsub.f32 %v122_v5, %v146_v16  ;;  %v163_v28 = vsub.f32 %v123_v6, %v147_v17  ;;  %v150_v37 = vunpack.c.l.bf16 %v1629_v29  ;;  %v427_v43 = vld [vmem:[#allocation6] sm:$0xff]  ;;  %v133_v55 = vld [vmem:[%s1871_s1 + $0x78] sm:$0xff]  ;;  %v448_v59 = vld [vmem:[#allocation8 + $0x28] sm:$0xff] }
  0x51   :  { %v175_v30 = vpack.c.bf16 %v161_v23, %v160_v22  ;;  %v164_v33 = vsub.f32 %v124_v9, %v148_v24  ;;  %v165_v34 = vsub.f32 %v125_v10, %v149_v25  ;;  %v151_v38 = vunpack.c.h.bf16 %v1629_v29  ;;  %1168 = vmatprep.mubr.f32.mxu1 %v427_v43  ;;  %v447_v58 = vld [vmem:[#allocation8 + $0x20] sm:$0xff]  ;;  %v449_v4 = vld [vmem:[#allocation8 + $0x30] sm:$0xff]  ;;  %v450_v5 = vld [vmem:[#allocation8 + $0x38] sm:$0xff] }
  0x52   :  { %1072 = vmatprep.subr.bf16.mxu0 %v174_v26  ;;  %v176_v36 = vpack.c.bf16 %v163_v28, %v162_v27  ;;  %v1641_v39 = vpack.c.bf16 %v129_v32, %v128_v31  ;;  %v110_v44 = vunpack.c.l.s8.bf16 %v1637_v35  ;;  %v1650_v49 = vpack.c.bf16 %v131_v41, %v130_v40  ;;  %v451_v15 = vld [vmem:[#allocation8 + $0x40] sm:$0xff]  ;;  %v452_v16 = vld [vmem:[#allocation8 + $0x48] sm:$0xff]  ;;  %v453_v21 = vld [vmem:[#allocation8 + $0x50] sm:$0xff] }
  0x53   :  { %1073 = vmatpush3.bf16.msra.mxu0 %v174_v26  ;;  %v177_v48 = vpack.c.bf16 %v165_v34, %v164_v33  ;;  %v166_v50 = vsub.f32 %v126_v18, %v150_v37  ;;  %v167_v51 = vsub.f32 %v127_v19, %v151_v38  ;;  %v1248_v56 = vpack.c.bf16 %v444_v45, %v443_v42  ;;  %v454_v22 = vld [vmem:[#allocation8 + $0x58] sm:$0xff]  ;;  %v455_v25 = vld [vmem:[#allocation8 + $0x60] sm:$0xff]  ;;  %v456_v26 = vld [vmem:[#allocation8 + $0x68] sm:$0xff] }
  0x54   :  { %1074 = vmatprep.subr.bf16.mxu0 %v175_v30  ;;  %v152_v52 = vunpack.c.l.bf16 %v1641_v39  ;;  %v153_v53 = vunpack.c.h.bf16 %v1641_v39  ;;  %1088 = vmatprep.mubr.bf16.mxu0 %v110_v44  ;;  %v1252_v57 = vpack.c.bf16 %v446_v47, %v445_v46  ;;  %v154_v60 = vunpack.c.l.bf16 %v1650_v49  ;;  %v1668_v27 = vld [vmem:[#allocation3 + $0x8] sm:$0xff]  ;;  %v1679_v38 = vld [vmem:[#allocation3 + $0x10] sm:$0xff]  ;;  %v630_v45 = vld [vmem:[#allocation9 + $0x18] sm:$0xff] }
  0x55   :  { %v1663_v61 = vpack.c.bf16 %v133_v55, %v132_v54  ;;  %1249 = vmatprep.subr.bf16.mxu1 %v1248_v56  ;;  %v178_v62 = vpack.c.bf16 %v167_v51, %v166_v50  ;;  %v155_v1 = vunpack.c.h.bf16 %v1650_v49  ;;  %v1256_v2 = vpack.c.bf16 %v448_v59, %v447_v58  ;;  %v628_v37 = vld [vmem:[#allocation9 + $0x8] sm:$0xff]  ;;  %v629_v43 = vld [vmem:[#allocation9 + $0x10] sm:$0xff]  ;;  %v1691_v50 = vld [vmem:[#allocation3 + $0x18] sm:$0xff] }
  0x56   :  { %v168_v63 = vsub.f32 %v128_v31, %v152_v52  ;;  %v169_v0 = vsub.f32 %v129_v32, %v153_v53  ;;  %1251 = vmatpush3.bf16.msra.mxu1 %v1248_v56  ;;  %v170_v10 = vsub.f32 %v130_v40, %v154_v60  ;;  %v1260_v14 = vpack.c.bf16 %v450_v5, %v449_v4  ;;  %v457_v31 = vld [vmem:[#allocation8 + $0x70] sm:$0xff]  ;;  %v458_v32 = vld [vmem:[#allocation8 + $0x78] sm:$0xff]  ;;  %v431_v53 = vld [vmem:[#allocation6 + $0x20] sm:$0xff] }
  0x57   :  { %1075 = vmatpush3.bf16.msra.mxu0 %v175_v30  ;;  %1253 = vmatprep.subr.bf16.mxu1 %v1252_v57  ;;  %v156_v6 = vunpack.c.l.bf16 %v1663_v61  ;;  %v171_v11 = vsub.f32 %v131_v41, %v155_v1  ;;  %v157_v12 = vunpack.c.h.bf16 %v1663_v61  ;;  %v1264_v20 = vpack.c.bf16 %v452_v16, %v451_v15  ;;  %v429_v46 = vld [vmem:[#allocation6 + $0x10] sm:$0xff]  ;;  %v430_v51 = vld [vmem:[#allocation6 + $0x18] sm:$0xff]  ;;  %v636_v60 = vld [vmem:[#allocation9 + $0x48] sm:$0xff] }
  0x58   :  { %1076 = vmatprep.subr.bf16.mxu0 %v176_v36  ;;  %v179_v9 = vpack.c.bf16 %v169_v0, %v168_v63  ;;  %v1268_v24 = vpack.c.bf16 %v454_v22, %v453_v21  ;;  %v1272_v28 = vpack.c.bf16 %v456_v26, %v455_v25  ;;  %v111_v30 = vunpack.c.h.s8.bf16 %v1637_v35  ;;  %v634_v56 = vld [vmem:[#allocation9 + $0x38] sm:$0xff]  ;;  %v433_v58 = vld [vmem:[#allocation6 + $0x30] sm:$0xff]  ;;  %v435_v0 = vld [vmem:[#allocation6 + $0x40] sm:$0xff] }
  0x59   :  { %v180_v17 = vpack.c.bf16 %v171_v11, %v170_v10  ;;  %v172_v18 = vsub.f32 %v132_v54, %v156_v6  ;;  %v173_v19 = vsub.f32 %v133_v55, %v157_v12  ;;  %v112_v33 = vunpack.c.l.s8.bf16 %v1668_v27  ;;  %v633_v55 = vld [vmem:[#allocation9 + $0x30] sm:$0xff]  ;;  %v436_v4 = vld [vmem:[#allocation6 + $0x48] sm:$0xff]  ;;  %v439_v11 = vld [vmem:[#allocation6 + $0x60] sm:$0xff] }
  0x5a   :  { %1255 = vmatpush3.bf16.msra.mxu1 %v1252_v57  ;;  %v1276_v34 = vpack.c.bf16 %v458_v32, %v457_v31  ;;  %v113_v41 = vunpack.c.h.s8.bf16 %v1668_v27  ;;  %v114_v42 = vunpack.c.l.s8.bf16 %v1679_v38  ;;  %v1284_v47 = vpack.c.bf16 %v630_v45, %v629_v43  ;;  %v432_v57 = vld [vmem:[#allocation6 + $0x28] sm:$0xff]  ;;  %v437_v5 = vld [vmem:[#allocation6 + $0x50] sm:$0xff]  ;;  %v799_v22 = vld [vmem:[%s1873_s3 + $0x20] sm:$0xff] }
  0x5b   :  { %1077 = vmatpush3.bf16.msra.mxu0 %v176_v36  ;;  %1257 = vmatprep.subr.bf16.mxu1 %v1256_v2  ;;  %v181_v23 = vpack.c.bf16 %v173_v19, %v172_v18  ;;  %v627_v36 = vld [vmem:[#allocation9] sm:$0xff]  ;;  %v115_v52 = vunpack.c.h.s8.bf16 %v1679_v38  ;;  %v1292_v59 = vpack.c.bf16 %v634_v56, %v633_v55  ;;  %v117_v63 = vunpack.c.h.s8.bf16 %v1691_v50  ;;  %v640_v10 = vld [vmem:[#allocation9 + $0x68] sm:$0xff]  ;;  %v641_v35 = vld [vmem:[#allocation9 + $0x70] sm:$0xff] }
  0x5c   :  { %1078 = vmatprep.subr.bf16.mxu0 %v177_v48  ;;  %v1280_v40 = vpack.c.bf16 %v628_v37, %v627_v36  ;;  %v797_v16 = vld [vmem:[%s1873_s3 + $0x10] sm:$0xff]  ;;  %v1462_v18 = vmov 0   ;;  %v798_v19 = vld [vmem:[%s1873_s3 + $0x18] sm:$0xff]  ;;  %v800_v21 = vld [vmem:[%s1873_s3 + $0x28] sm:$0xff] }
  0x5d   :  { %1337 = vset.pattern.permute.xlu1 %v1462_v18  ;;  %1336 = vset.pattern.permute.xlu0 %v1462_v18  ;;  %v804_v25 = vld [vmem:[%s1873_s3 + $0x48] sm:$0xff]  ;;  %v803_v26 = vld [vmem:[%s1873_s3 + $0x40] sm:$0xff]  ;;  %v806_v27 = vld [vmem:[%s1873_s3 + $0x58] sm:$0xff] }
  0x5e   :  { %1259 = vmatpush3.bf16.msra.mxu1 %v1256_v2  ;;  %v637_v2 = vld [vmem:[#allocation9 + $0x50] sm:$0xff]  ;;  %823 = vperm.xlu1 %1337, %v797_v16   ;;  %v807_v31 = vld [vmem:[%s1873_s3 + $0x60] sm:$0xff]  ;;  %v810_v32 = vld [vmem:[%s1873_s3 + $0x78] sm:$0xff] }
  0x5f   :  { %1079 = vmatpush3.bf16.msra.mxu0 %v177_v48  ;;  %1261 = vmatprep.subr.bf16.mxu1 %v1260_v14  ;;  %v632_v48 = vld [vmem:[#allocation9 + $0x28] sm:$0xff] }
  0x60   :  { %1080 = vmatprep.subr.bf16.mxu0 %v178_v62 }
  0x62   :  { %1263 = vmatpush3.bf16.msra.mxu1 %v1260_v14  ;;  %v442_v14 = vld [vmem:[#allocation6 + $0x78] sm:$0xff]  ;;  %828 = vperm.xlu1 %1337, %v798_v19  }
  0x63   :  { %1081 = vmatpush3.bf16.msra.mxu0 %v178_v62  ;;  %1265 = vmatprep.subr.bf16.mxu1 %v1264_v20  ;;  %v434_v62 = vld [vmem:[#allocation6 + $0x38] sm:$0xff] }
  0x64   :  { %1082 = vmatprep.subr.bf16.mxu0 %v179_v9 }
  0x66   :  { %1267 = vmatpush3.bf16.msra.mxu1 %v1264_v20  ;;  %v796_v20 = vld [vmem:[%s1873_s3 + $0x8] sm:$0xff]  ;;  %838 = vperm.xlu1 %1337, %v800_v21  }
  0x67   :  { %1083 = vmatpush3.bf16.msra.mxu0 %v179_v9  ;;  %1269 = vmatprep.subr.bf16.mxu1 %v1268_v24  ;;  %v639_v9 = vld [vmem:[#allocation9 + $0x60] sm:$0xff] }
  0x68   :  { %1084 = vmatprep.subr.bf16.mxu0 %v180_v17  ;;  %v1304_v12 = vpack.c.bf16 %v640_v10, %v639_v9  ;;  %v1802_v9 = vld [vmem:[%s1877_s7] ss:$0 sm:$0xff] }
  0x69   :  { %v1807_v10 = vld [vmem:[%s1875_s5] ss:$0 sm:$0xff]  ;;  %s1463_s5 = smov [#allocation11]  }
  0x6a   :  { %1271 = vmatpush3.bf16.msra.mxu1 %v1268_v24  ;;  %v801_v24 = vld [vmem:[%s1873_s3 + $0x30] sm:$0xff]  ;;  %s960_s7 = sshll.u32 %s1463_s5, 4  ;;  %s961_s7 = int_to_ptr.vmem [resolvable:$true] %s960_s7 }
  0x6b   :  { %1085 = vmatpush3.bf16.msra.mxu0 %v180_v17  ;;  %1273 = vmatprep.subr.bf16.mxu1 %v1272_v28  ;;  %v795_v17 = vld [vmem:[%s1873_s3] sm:$0xff]  ;;  %s1426_s26 = scalar_lea.vmem %s961_s7, 2048  ;;  %p1431_p5 = scmp.lt.s32.totalorder %s961_s7, %s961_s7 }
  0x6c   :  { %1086 = vmatprep.subr.bf16.mxu0 %v181_v23  ;;  %813 = vperm.xlu0 %1336, %v795_v17   ;;  %p1427_p4 = scmp.ne.s32.totalorder %s961_s7, %s1426_s26  ;;  %p1432_p6 = scmp.lt.s32.totalorder %s1426_s26, %s1426_s26 }
  0x6e   :  { %1275 = vmatpush3.bf16.msra.mxu1 %v1272_v28  ;;  %v805_v28 = vld [vmem:[%s1873_s3 + $0x50] sm:$0xff]  ;;  %p1433_p7 = por %p1432_p6, %p1431_p5 }
  0x6f   :  { %1087 = vmatpush3.bf16.msra.mxu0 %v181_v23  ;;  %1277 = vmatprep.subr.bf16.mxu1 %v1276_v34  ;;  %v802_v23 = vld [vmem:[%s1873_s3 + $0x38] sm:$0xff] }
  0x70   :  { %1104 = vmatprep.subr.bf16.mxu0 %v1592_v3  ;;  %818 = vperm.xlu0 %1336, %v796_v20   ;;  %p1434_p8 = pnand %p1433_p7, %p1427_p4 }
  0x71   :  { %848 = vperm.xlu1 %1337, %v802_v23  }
  0x72   :  { %1089 = vmatmul.mubr.bf16.vlgmr.msra.gmra.mrb[0].mxu0 %v111_v30  ;;  %1279 = vmatpush3.bf16.msra.mxu1 %v1276_v34 }
  0x73   :  { %1105 = vmatpush3.bf16.msra.mxu0 %v1592_v3  ;;  %1092 = vmatprep.mubr.bf16.mxu0 %v112_v33  ;;  %v428_v3 = vld [vmem:[#allocation6 + $0x8] sm:$0xff] }
  0x74   :  { %1106 = vmatprep.subr.bf16.mxu0 %v1603_v7  ;;  %1281 = vmatprep.subr.bf16.mxu1 %v1280_v40 }
  0x75   :  { %1169 = vmatmul.mubr.f32.vlgmr.msra.gmra.mrb[0].mxu1 %v428_v3  ;;  %833 = vperm.xlu0 %1336, %v799_v22  }
  0x76   :  { %1283 = vmatpush3.bf16.msra.mxu1 %v1280_v40  ;;  %1171 = vmatprep.mubr.f32.mxu1 %v429_v46 }
  0x77   :  { %1107 = vmatpush3.bf16.msra.mxu0 %v1603_v7  ;;  %v631_v7 = vld [vmem:[#allocation9 + $0x20] sm:$0xff]  ;;  %1285 = vmatprep.subr.bf16.mxu1 %v1284_v47 }
  0x78   :  { %1108 = vmatprep.subr.bf16.mxu0 %v1605_v8  ;;  %v1288_v54 = vpack.c.bf16 %v632_v48, %v631_v7  ;;  %858 = vperm.xlu1 %1337, %v804_v25  }
  0x79   :  { %1172 = vmatmul.mubr.f32.gmra.mrb[2].mxu1 %v430_v51  ;;  %843 = vperm.xlu0 %1336, %v801_v24  }
  0x7a   :  { %1093 = vmatmul.mubr.bf16.gmra.mrb[4].mxu0 %v113_v41  ;;  %1287 = vmatpush3.bf16.msra.mxu1 %v1284_v47 }
  0x7b   :  { %1109 = vmatpush3.bf16.msra.mxu0 %v1605_v8  ;;  %1096 = vmatprep.mubr.bf16.mxu0 %v114_v42  ;;  %v116_v8 = vunpack.c.l.s8.bf16 %v1691_v50 }
  0x7c   :  { %1110 = vmatprep.subr.bf16.mxu0 %v1615_v13  ;;  %1174 = vmatprep.mubr.f32.mxu1 %v431_v53 }
  0x7d   :  { %1289 = vmatprep.subr.bf16.mxu1 %v1288_v54  ;;  %1175 = vmatmul.mubr.f32.gmra.mrb[4].mxu1 %v432_v57 }
  0x7e   :  { %1291 = vmatpush3.bf16.msra.mxu1 %v1288_v54  ;;  %1177 = vmatprep.mubr.f32.mxu1 %v433_v58 }
  0x7f   :  { %1111 = vmatpush3.bf16.msra.mxu0 %v1615_v13  ;;  %v635_v13 = vld [vmem:[#allocation9 + $0x40] sm:$0xff]  ;;  %1293 = vmatprep.subr.bf16.mxu1 %v1292_v59 }
  0x80   :  { %1112 = vmatprep.subr.bf16.mxu0 %v1629_v29  ;;  %v1296_v1 = vpack.c.bf16 %v636_v60, %v635_v13  ;;  %853 = vperm.xlu0 %1336, %v803_v26  }
  0x81   :  { %1178 = vmatmul.mubr.f32.gmra.mrb[6].mxu1 %v434_v62  ;;  %868 = vperm.xlu1 %1337, %v806_v27  }
  0x82   :  { %1097 = vmatmul.mubr.bf16.gmra.mrb[8].mxu0 %v115_v52  ;;  %1295 = vmatpush3.bf16.msra.mxu1 %v1292_v59 }
  0x83   :  { %1113 = vmatpush3.bf16.msra.mxu0 %v1629_v29  ;;  %1100 = vmatprep.mubr.bf16.mxu0 %v116_v8  ;;  %v638_v29 = vld [vmem:[#allocation9 + $0x58] sm:$0xff] }
  0x84   :  { %1114 = vmatprep.subr.bf16.mxu0 %v1641_v39  ;;  %1180 = vmatprep.mubr.f32.mxu1 %v435_v0  ;;  %v1300_v6 = vpack.c.bf16 %v638_v29, %v637_v2 }
  0x85   :  { %1297 = vmatprep.subr.bf16.mxu1 %v1296_v1  ;;  %1181 = vmatmul.mubr.f32.gmra.mrb[8].mxu1 %v436_v4 }
  0x86   :  { %1299 = vmatpush3.bf16.msra.mxu1 %v1296_v1  ;;  %1183 = vmatprep.mubr.f32.mxu1 %v437_v5 }
  0x87   :  { %1115 = vmatpush3.bf16.msra.mxu0 %v1641_v39  ;;  %v438_v39 = vld [vmem:[#allocation6 + $0x58] sm:$0xff]  ;;  %1301 = vmatprep.subr.bf16.mxu1 %v1300_v6 }
  0x88   :  { %1116 = vmatprep.subr.bf16.mxu0 %v1650_v49  ;;  %863 = vperm.xlu0 %1336, %v805_v28  }
  0x89   :  { %1184 = vmatmul.mubr.f32.gmra.mrb[10].mxu1 %v438_v39 }
  0x8a   :  { %1101 = vmatmul.mubr.bf16.gmra.mrb[12].mxu0 %v117_v63  ;;  %1303 = vmatpush3.bf16.msra.mxu1 %v1300_v6 }
  0x8b   :  { %1117 = vmatpush3.bf16.msra.mxu0 %v1650_v49  ;;  %1120 = vmatprep.mubr.bf16.mxu0 %v110_v44  ;;  %v440_v49 = vld [vmem:[#allocation6 + $0x68] sm:$0xff]  ;;  %v441_v44 = vld [vmem:[#allocation6 + $0x70] sm:$0xff] }
  0x8c   :  { %1118 = vmatprep.subr.bf16.mxu0 %v1663_v61  ;;  %1186 = vmatprep.mubr.f32.mxu1 %v439_v11 }
  0x8d   :  { %1305 = vmatprep.subr.bf16.mxu1 %v1304_v12  ;;  %1187 = vmatmul.mubr.f32.gmra.mrb[12].mxu1 %v440_v49 }
  0x8e   :  { %1307 = vmatpush3.bf16.msra.mxu1 %v1304_v12  ;;  %1189 = vmatprep.mubr.f32.mxu1 %v441_v44 }
  0x8f   :  { %1119 = vmatpush3.bf16.msra.mxu0 %v1663_v61  ;;  %v642_v61 = vld [vmem:[#allocation9 + $0x78] sm:$0xff]  ;;  %873 = vperm.xlu0 %1336, %v807_v31  }
  0x90   :  { %v1308_v15 = vpack.c.bf16 %v642_v61, %v641_v35 }
  0x91   :  { %1190 = vmatmul.mubr.f32.gmra.mrb[14].mxu1 %v442_v14 }
  0x92   :  { %1121 = vmatmul.mubr.bf16.vlgmr.msra.gmra.mrb[0].mxu0 %v111_v30  ;;  %1309 = vmatprep.subr.bf16.mxu1 %v1308_v15  ;;  %v808_v30 = vld [vmem:[%s1873_s3 + $0x68] sm:$0xff] }
  0x93   :  { %1124 = vmatprep.mubr.bf16.mxu0 %v112_v33  ;;  %1311 = vmatpush3.bf16.msra.mxu1 %v1308_v15  ;;  %v809_v33 = vld [vmem:[%s1873_s3 + $0x70] sm:$0xff] }
  0x94   :  { %878 = vperm.xlu1 %1337, %v808_v30   ;;  %883 = vperm.xlu0 %1336, %v809_v33  }
  0x98   :  { %888 = vperm.xlu1 %1337, %v810_v32  }
  0x9a   :  { %1125 = vmatmul.mubr.bf16.gmra.mrb[4].mxu0 %v113_v41 }
  0x9b   :  { %1128 = vmatprep.mubr.bf16.mxu0 %v114_v42 }
  0xa2   :  { %1129 = vmatmul.mubr.bf16.gmra.mrb[8].mxu0 %v115_v52 }
  0xa3   :  { %1132 = vmatprep.mubr.bf16.mxu0 %v116_v8 }
  0xaa   :  { %1133 = vmatmul.mubr.bf16.gmra.mrb[12].mxu0 %v117_v63 }
  0xdd   :  { %v824_v29 = vpop.permute.xlu1 %823 }
  0xe1   :  { %v829_v5 = vpop.permute.xlu1 %828 }
  0xe5   :  { %v839_v39 = vpop.permute.xlu1 %838 }
  0xeb   :  { %v814_v4 = vpop.permute.xlu0 %813 }
  0xef   :  { %v819_v6 = vpop.permute.xlu0 %818 }
  0xf0   :  { %v849_v21 = vpop.permute.xlu1 %848 }
  0xf4   :  { %v834_v12 = vpop.permute.xlu0 %833 }
  0xf8   :  { %v844_v25 = vpop.permute.xlu0 %843 }
 0x148   :  { %v1170_v34 = vpop.f32.mrb[0].mxu1 }
 0x149   :  { %v532_v36 = vpop.f32.mrb[1].mxu1  ;;  %v538_v61 = vadd.f32 %v1170_v34, %v1807_v10 }
 0x14a   :  { %v533_v15 = vadd.f32 %v1807_v10, %v532_v36 }
 0x14c   :  { %v1771_v37 = vpop.f32.mrb[2].mxu1 }
 0x14d   :  { %v1773_v38 = vpop.f32.mrb[3].mxu1  ;;  %v548_v24 = vadd.f32 %v1771_v37, %v1807_v10 }
 0x14e   :  { %v543_v28 = vadd.f32 %v1807_v10, %v1773_v38 }
 0x150   :  { %v1775_v40 = vpop.f32.mrb[4].mxu1 }
 0x151   :  { %v1777_v41 = vpop.f32.mrb[5].mxu1  ;;  %v558_v37 = vadd.f32 %v1775_v40, %v1807_v10 }
 0x152   :  { %v553_v38 = vadd.f32 %v1807_v10, %v1777_v41 }
 0x154   :  { %v1779_v42 = vpop.f32.mrb[6].mxu1 }
 0x155   :  { %v1781_v43 = vpop.f32.mrb[7].mxu1  ;;  %v568_v40 = vadd.f32 %v1779_v42, %v1807_v10 }
 0x156   :  { %v563_v41 = vadd.f32 %v1807_v10, %v1781_v43 }
 0x158   :  { %v1783_v45 = vpop.f32.mrb[8].mxu1 }
 0x159   :  { %v1785_v3 = vpop.f32.mrb[9].mxu1  ;;  %v578_v42 = vadd.f32 %v1783_v45, %v1807_v10 }
 0x15a   :  { %v573_v43 = vadd.f32 %v1807_v10, %v1785_v3 }
 0x15c   :  { %v1787_v46 = vpop.f32.mrb[10].mxu1 }
 0x15d   :  { %v1789_v47 = vpop.f32.mrb[11].mxu1  ;;  %v588_v45 = vadd.f32 %v1787_v46, %v1807_v10 }
 0x15e   :  { %v583_v3 = vadd.f32 %v1807_v10, %v1789_v47 }
 0x160   :  { %v1791_v51 = vpop.f32.mrb[12].mxu1 }
 0x161   :  { %v1793_v53 = vpop.f32.mrb[13].mxu1  ;;  %v598_v46 = vadd.f32 %v1791_v51, %v1807_v10 }
 0x162   :  { %v593_v47 = vadd.f32 %v1807_v10, %v1793_v53 }
 0x164   :  { %v1795_v1 = vpop.f32.mrb[14].mxu1 }
 0x165   :  { %v1122_v7 = vpop.f32.mrb[0].mxu0  ;;  %v1797_v2 = vpop.f32.mrb[15].mxu1  ;;  %v608_v51 = vadd.f32 %v1795_v1, %v1807_v10 }
 0x166   :  { %v329_v48 = vpop.f32.mrb[1].mxu0  ;;  %v603_v53 = vadd.f32 %v1807_v10, %v1797_v2 }
 0x167   :  { %v1123_v50 = vpop.f32.mrb[2].mxu0  ;;  %1224 = vmatprep.mubr.f32.mxu1 %v329_v48 }
 0x168   :  { %v332_v52 = vpop.f32.mrb[3].mxu0 }
 0x169   :  { %1225 = vmatmul.mubr.f32.vlgmr.msra.gmra.mrb[16].mxu1 %v332_v52 }
 0x16a   :  { %1227 = vmatprep.mubr.f32.mxu1 %v1122_v7 }
 0x16d   :  { %v1126_v54 = vpop.f32.mrb[4].mxu0  ;;  %1228 = vmatmul.mubr.f32.gmra.mrb[18].mxu1 %v1123_v50 }
 0x16e   :  { %v345_v8 = vpop.f32.mrb[5].mxu0 }
 0x16f   :  { %v1127_v55 = vpop.f32.mrb[6].mxu0  ;;  %1230 = vmatprep.mubr.f32.mxu1 %v345_v8 }
 0x170   :  { %v348_v56 = vpop.f32.mrb[7].mxu0 }
 0x171   :  { %1231 = vmatmul.mubr.f32.gmra.mrb[20].mxu1 %v348_v56 }
 0x172   :  { %1233 = vmatprep.mubr.f32.mxu1 %v1126_v54  ;;  %v859_v54 = vpop.permute.xlu1 %858 }
 0x175   :  { %v1130_v57 = vpop.f32.mrb[8].mxu0  ;;  %1234 = vmatmul.mubr.f32.gmra.mrb[22].mxu1 %v1127_v55 }
 0x176   :  { %v361_v58 = vpop.f32.mrb[9].mxu0 }
 0x177   :  { %v1131_v59 = vpop.f32.mrb[10].mxu0  ;;  %1236 = vmatprep.mubr.f32.mxu1 %v361_v58 }
 0x178   :  { %v364_v13 = vpop.f32.mrb[11].mxu0 }
 0x179   :  { %1237 = vmatmul.mubr.f32.gmra.mrb[24].mxu1 %v364_v13 }
 0x17a   :  { %1239 = vmatprep.mubr.f32.mxu1 %v1130_v57  ;;  %v854_v57 = vpop.permute.xlu0 %853 }
 0x17d   :  { %v1134_v60 = vpop.f32.mrb[12].mxu0  ;;  %1240 = vmatmul.mubr.f32.gmra.mrb[26].mxu1 %v1131_v59 }
 0x17e   :  { %v377_v62 = vpop.f32.mrb[13].mxu0 }
 0x17f   :  { %v1135_v63 = vpop.f32.mrb[14].mxu0  ;;  %1242 = vmatprep.mubr.f32.mxu1 %v377_v62 }
 0x180   :  { %v380_v0 = vpop.f32.mrb[15].mxu0 }
 0x181   :  { %1243 = vmatmul.mubr.f32.gmra.mrb[28].mxu1 %v380_v0 }
 0x182   :  { %1245 = vmatprep.mubr.f32.mxu1 %v1134_v60 }
 0x185   :  { %1246 = vmatmul.mubr.f32.gmra.mrb[30].mxu1 %v1135_v63 }
 0x23c   :  { %v1226_v11 = vpop.f32.mrb[16].mxu1 }
 0x23d   :  { %v722_v49 = vadd.f32 %v1226_v11, %v1802_v9  ;;  %v716_v44 = vpop.f32.mrb[17].mxu1 }
 0x23e   :  { %v717_v35 = vadd.f32 %v1802_v9, %v716_v44 }
 0x23f   :  { %v892_v14 = vmul.f32 %v819_v6, %v722_v49 }
 0x240   :  { %v891_v16 = vmul.f32 %v814_v4, %v717_v35  ;;  %v1229_v17 = vpop.f32.mrb[18].mxu1  ;;  %v864_v35 = vpop.permute.xlu0 %863 }
 0x241   :  { %v908_v18 = vadd.f32 %v892_v14, %v538_v61  ;;  %v732_v19 = vadd.f32 %v1229_v17, %v1802_v9  ;;  %v726_v20 = vpop.f32.mrb[19].mxu1 }
 0x242   :  { %v907_v22 = vadd.f32 %v891_v16, %v533_v15  ;;  %v727_v23 = vadd.f32 %v1802_v9, %v726_v20 }
 0x243   :  { %v924_v26 = vmax.f32 %v908_v18, 0.0  ;;  %v894_v27 = vmul.f32 %v829_v5, %v732_v19 }
 0x244   :  { %v923_v30 = vmax.f32 %v907_v22, 0.0  ;;  %v893_v31 = vmul.f32 %v824_v29, %v727_v23  ;;  %v1232_v32 = vpop.f32.mrb[20].mxu1 }
 0x245   :  { %940 = vst [vmem:[#allocation11 + $0x8] sm:$0xff] %v924_v26  ;;  %v910_v33 = vadd.f32 %v894_v27, %v548_v24  ;;  %v742_v34 = vadd.f32 %v1232_v32, %v1802_v9  ;;  %v736_v36 = vpop.f32.mrb[21].mxu1 }
 0x246   :  { %939 = vst [vmem:[#allocation11] sm:$0xff] %v923_v30  ;;  %v909_v7 = vadd.f32 %v893_v31, %v543_v28  ;;  %v737_v48 = vadd.f32 %v1802_v9, %v736_v36  ;;  %v874_v30 = vpop.permute.xlu0 %873 }
 0x247   :  { %v926_v50 = vmax.f32 %v910_v33, 0.0  ;;  %v896_v52 = vmul.f32 %v839_v39, %v742_v34 }
 0x248   :  { %v925_v8 = vmax.f32 %v909_v7, 0.0  ;;  %v895_v55 = vmul.f32 %v834_v12, %v737_v48  ;;  %v1235_v56 = vpop.f32.mrb[22].mxu1  ;;  %v869_v12 = vpop.permute.xlu1 %868 }
 0x249   :  { %942 = vst [vmem:[#allocation11 + $0x18] sm:$0xff] %v926_v50  ;;  %v912_v58 = vadd.f32 %v896_v52, %v558_v37  ;;  %v752_v59 = vadd.f32 %v1235_v56, %v1802_v9  ;;  %v746_v13 = vpop.f32.mrb[23].mxu1 }
 0x24a   :  { %941 = vst [vmem:[#allocation11 + $0x10] sm:$0xff] %v925_v8  ;;  %v911_v60 = vadd.f32 %v895_v55, %v553_v38  ;;  %v747_v62 = vadd.f32 %v1802_v9, %v746_v13 }
 0x24b   :  { %v928_v63 = vmax.f32 %v912_v58, 0.0  ;;  %v898_v0 = vmul.f32 %v849_v21, %v752_v59  ;;  %v884_v58 = vpop.permute.xlu0 %883 }
 0x24c   :  { %v927_v29 = vmax.f32 %v911_v60, 0.0  ;;  %v897_v4 = vmul.f32 %v844_v25, %v747_v62  ;;  %v1238_v5 = vpop.f32.mrb[24].mxu1  ;;  %v879_v25 = vpop.permute.xlu1 %878 }
 0x24d   :  { %944 = vst [vmem:[#allocation11 + $0x28] sm:$0xff] %v928_v63  ;;  %v914_v6 = vadd.f32 %v898_v0, %v568_v40  ;;  %v762_v39 = vadd.f32 %v1238_v5, %v1802_v9  ;;  %v756_v11 = vpop.f32.mrb[25].mxu1 }
 0x24e   :  { %943 = vst [vmem:[#allocation11 + $0x20] sm:$0xff] %v927_v29  ;;  %v913_v49 = vadd.f32 %v897_v4, %v563_v41  ;;  %v757_v44 = vadd.f32 %v1802_v9, %v756_v11 }
 0x24f   :  { %v930_v61 = vmax.f32 %v914_v6, 0.0  ;;  %v900_v14 = vmul.f32 %v859_v54, %v762_v39 }
 0x250   :  { %v929_v15 = vmax.f32 %v913_v49, 0.0  ;;  %v899_v16 = vmul.f32 %v854_v57, %v757_v44  ;;  %v1241_v17 = vpop.f32.mrb[26].mxu1  ;;  %v889_v55 = vpop.permute.xlu1 %888 }
 0x251   :  { %946 = vst [vmem:[#allocation11 + $0x38] sm:$0xff] %v930_v61  ;;  %v916_v18 = vadd.f32 %v900_v14, %v578_v42  ;;  %v772_v19 = vadd.f32 %v1241_v17, %v1802_v9  ;;  %v766_v20 = vpop.f32.mrb[27].mxu1 }
 0x252   :  { %945 = vst [vmem:[#allocation11 + $0x30] sm:$0xff] %v929_v15  ;;  %v915_v21 = vadd.f32 %v899_v16, %v573_v43  ;;  %v767_v22 = vadd.f32 %v1802_v9, %v766_v20 }
 0x253   :  { %v932_v23 = vmax.f32 %v916_v18, 0.0  ;;  %v902_v24 = vmul.f32 %v869_v12, %v772_v19 }
 0x254   :  { %v931_v26 = vmax.f32 %v915_v21, 0.0  ;;  %v901_v27 = vmul.f32 %v864_v35, %v767_v22  ;;  %v1244_v28 = vpop.f32.mrb[28].mxu1 }
 0x255   :  { %948 = vst [vmem:[#allocation11 + $0x48] sm:$0xff] %v932_v23  ;;  %v918_v31 = vadd.f32 %v902_v24, %v588_v45  ;;  %v782_v32 = vadd.f32 %v1244_v28, %v1802_v9  ;;  %v776_v33 = vpop.f32.mrb[29].mxu1 }
 0x256   :  { %947 = vst [vmem:[#allocation11 + $0x40] sm:$0xff] %v931_v26  ;;  %v917_v34 = vadd.f32 %v901_v27, %v583_v3  ;;  %v777_v36 = vadd.f32 %v1802_v9, %v776_v33 }
 0x257   :  { %v934_v7 = vmax.f32 %v918_v31, 0.0  ;;  %v904_v48 = vmul.f32 %v879_v25, %v782_v32 }
 0x258   :  { %v933_v37 = vmax.f32 %v917_v34, 0.0  ;;  %v903_v50 = vmul.f32 %v874_v30, %v777_v36  ;;  %v1247_v52 = vpop.f32.mrb[30].mxu1 }
 0x259   :  { %950 = vst [vmem:[#allocation11 + $0x58] sm:$0xff] %v934_v7  ;;  %v920_v38 = vadd.f32 %v904_v48, %v598_v46  ;;  %v792_v54 = vadd.f32 %v1247_v52, %v1802_v9  ;;  %v786_v8 = vpop.f32.mrb[31].mxu1 }
 0x25a   :  { %949 = vst [vmem:[#allocation11 + $0x50] sm:$0xff] %v933_v37  ;;  %v919_v56 = vadd.f32 %v903_v50, %v593_v47  ;;  %v787_v57 = vadd.f32 %v1802_v9, %v786_v8 }
 0x25b   :  { %v936_v59 = vmax.f32 %v920_v38, 0.0  ;;  %v906_v13 = vmul.f32 %v889_v55, %v792_v54 }
 0x25c   :  { %v935_v60 = vmax.f32 %v919_v56, 0.0  ;;  %v905_v62 = vmul.f32 %v884_v58, %v787_v57 }
 0x25d   :  { %952 = vst [vmem:[#allocation11 + $0x68] sm:$0xff] %v936_v59  ;;  %v922_v40 = vadd.f32 %v906_v13, %v608_v51 }
 0x25e   :  { %951 = vst [vmem:[#allocation11 + $0x60] sm:$0xff] %v935_v60  ;;  %v921_v63 = vadd.f32 %v905_v62, %v603_v53 }
 0x25f   :  { %v938_v0 = vmax.f32 %v922_v40, 0.0 }
 0x260   :  { %v937_v41 = vmax.f32 %v921_v63, 0.0 }
 0x261   :  { %954 = vst [vmem:[#allocation11 + $0x78] sm:$0xff] %v938_v0 }
 0x262   :  { %953 = vst [vmem:[#allocation11 + $0x70] sm:$0xff] %v937_v41 }
 0x263   :  { %1437 = shalt.err (!%p1434_p8)
}
 0x264   :  { %s1438_s2 = scalar_lea.hbm %s1878_s8, 2048 }
 0x265   :  { %p1439_p9 = scmp.ne.s32.totalorder %s1878_s8, %s1438_s2  ;;  %p1442_p10 = scmp.lt.u32.totalorder %s1438_s2, %s1878_s8 }
 0x267   :  { %p1444_p11 = pnand %p1442_p10, %p1439_p9 }
 0x269   :  { %1447 = shalt.err (!%p1444_p11)
}
 0x26a   :  { %966 = dma.vmem_to_hbm [thread:$0]  %s961_s7, 2048, %s1878_s8, [#allocation5], %s1458_s17, %s1458_s17, %s1459_s18  }
 0x26b   :  { %1454 = dma.done.wait [#allocation5], 2048  }
 0x26c   :  { %1455 = vsyncadd [#allocation5], 4294965248 }
 0x26d   :  { %970 = vsyncpa [#allocation4], 1 }
 0x26e   :  { %971 = vsyncpa [#allocation7], 1 }
 0x26f   :  { %972 = vsyncpa [#allocation10], 1 }
 0x270   :  { %973 = vsyncpa [#allocation5], 1 }

</bundles_post_ra>
